<compile_context>
chip_gen: v7x
topology: tpu7x:2x2x1
jax: 0.10.0
libtpu: 0.0.40
codegen_flags: <defaults>
</compile_context>

<pallas_src>
import math

import jax
import jax.numpy as jnp
from jax import lax
from jax.experimental import pallas as pl
from jax.experimental.pallas import tpu as pltpu

# ---- small, module-consistent sizes -----------------------------------------
BATCH = 2
SEQ = 8
HID = 32            # hid_dim
PF = 64             # pf_dim
NHEADS = 4          # n_heads  (HID % NHEADS == 0)
HEAD = HID // NHEADS
EPS = 1e-5          # nn.LayerNorm default eps
INV_SCALE = 1.0 / math.sqrt(HEAD)
NEG_INF = -1e10


# =============================================================================
# Fused kernel: QKV -> MHA -> +res -> LN -> FFN -> +res -> LN
# =============================================================================
def encoder_layer_kernel(x_ref, bias_ref,
                         wqkv_ref, bqkv_ref, wo_ref, bo_ref,
                         w1_ref, b1_ref, w2_ref, b2_ref,
                         g_ref, beta_ref, out_ref):
    x = x_ref[...]                                             # (B*S, H)

    def layer_norm(z):
        mu = jnp.mean(z, axis=-1, keepdims=True)
        var = jnp.mean((z - mu) ** 2, axis=-1, keepdims=True)
        return (z - mu) * lax.rsqrt(var + EPS) * g_ref[...] + beta_ref[...]

    # Fused Q/K/V projection: one (B*S, H) x (H, 3H) MXU push, then slice.
    qkv = jnp.dot(x, wqkv_ref[...],
                  preferred_element_type=jnp.float32) + bqkv_ref[...]
    q = qkv[:, 0 * HID:1 * HID]
    k = qkv[:, 1 * HID:2 * HID]
    v = qkv[:, 2 * HID:3 * HID]

    # Multi-head attention, static unroll over (batch, head).  The per-head
    # output projection is accumulated, so no head concatenation is needed.
    attn_rows = []
    for b in range(BATCH):
        r0, r1 = b * SEQ, (b + 1) * SEQ
        bias_b = bias_ref[pl.ds(b, 1), :]                      # (1, S)
        proj_b = jnp.zeros((SEQ, HID), jnp.float32)
        for h in range(NHEADS):
            c0, c1 = h * HEAD, (h + 1) * HEAD
            qh = q[r0:r1, c0:c1]                               # (S, HEAD)
            kh = k[r0:r1, c0:c1]
            vh = v[r0:r1, c0:c1]
            # energy = qh @ kh^T (contract last dims; no transpose in VMEM)
            energy = lax.dot_general(qh, kh, (((1,), (1,)), ((), ())),
                                     preferred_element_type=jnp.float32)
            energy = energy * INV_SCALE + bias_b               # (S, S)
            # softmax over keys
            m = jnp.max(energy, axis=-1, keepdims=True)
            e = jnp.exp(energy - m)
            denom = jnp.sum(e, axis=-1, keepdims=True)
            attn = e * pl.reciprocal(denom, approx=True)
            ctx_h = jnp.dot(attn, vh,
                            preferred_element_type=jnp.float32)  # (S, HEAD)
            proj_b = proj_b + jnp.dot(ctx_h, wo_ref[pl.ds(c0, HEAD), :],
                                      preferred_element_type=jnp.float32)
        attn_rows.append(proj_b + bo_ref[...])
    attn_out = jnp.concatenate(attn_rows, axis=0)              # (B*S, H)

    # residual + LayerNorm (dropout = identity)
    x1 = layer_norm(x + attn_out)

    # position-wise FFN (Conv1d k=1 == per-token Linear) + residual + LayerNorm
    hdn = jnp.dot(x1, w1_ref[...],
                  preferred_element_type=jnp.float32) + b1_ref[...]
    hdn = jnp.maximum(hdn, 0.0)                                # ReLU
    y2 = jnp.dot(hdn, w2_ref[...],
                 preferred_element_type=jnp.float32) + b2_ref[...]

    out_ref[...] = layer_norm(x1 + y2)


# =============================================================================
# Wrapper
# =============================================================================
def encoder_layer(src, src_mask, params):
    B, S, H = src.shape
    xf = src.reshape(B * S, H)
    # additive attention bias: 0 for visible keys, -1e10 for masked keys
    bias = jnp.where(src_mask.reshape(B, S) == 0,
                     jnp.float32(NEG_INF), jnp.float32(0.0))
    # fuse Q/K/V weights into one (H, 3H) matmul weight
    wqkv = jnp.concatenate([params["wq"], params["wk"], params["wv"]], axis=1)
    bqkv = jnp.concatenate([params["bq"], params["bk"], params["bv"]], axis=1)

    vmem = pl.BlockSpec(memory_space=pltpu.MemorySpace.VMEM)
    out = pl.pallas_call(
        encoder_layer_kernel,
        out_shape=jax.ShapeDtypeStruct((B * S, H), jnp.float32),
        in_specs=[vmem] * 12,
        out_specs=vmem,
    )(xf, bias, wqkv, bqkv,
      params["wo"], params["bo"],
      params["w1"], params["b1"], params["w2"], params["b2"],
      params["ln_g"], params["ln_b"])
    return out.reshape(B, S, H)


# =============================================================================
# Pure-JAX reference (for a correctness sanity check)
# =============================================================================
def encoder_layer_ref(src, mask, p):
    B, S, H = src.shape

    def ln(x):
        mu = jnp.mean(x, axis=-1, keepdims=True)
        var = jnp.mean((x - mu) ** 2, axis=-1, keepdims=True)
        return (x - mu) / jnp.sqrt(var + EPS) * p["ln_g"][0] + p["ln_b"][0]

    q = src @ p["wq"] + p["bq"][0]
    k = src @ p["wk"] + p["bk"][0]
    v = src @ p["wv"] + p["bv"][0]
    q = q.reshape(B, S, NHEADS, HEAD).transpose(0, 2, 1, 3)
    k = k.reshape(B, S, NHEADS, HEAD).transpose(0, 2, 1, 3)
    v = v.reshape(B, S, NHEADS, HEAD).transpose(0, 2, 1, 3)
    energy = jnp.einsum("bhqd,bhkd->bhqk", q, k) / jnp.sqrt(jnp.float32(HEAD))
    key_mask = (mask == 0)[:, None, :, :]            # (B,1,1,S)
    energy = jnp.where(key_mask, NEG_INF, energy)
    attn = jax.nn.softmax(energy, axis=-1)
    ctx = jnp.einsum("bhqk,bhkd->bhqd", attn, v)
    ctx = ctx.transpose(0, 2, 1, 3).reshape(B, S, H)
    x = ln(src + (ctx @ p["wo"] + p["bo"][0]))

    h = jax.nn.relu(x @ p["w1"] + p["b1"][0])
    y = h @ p["w2"] + p["b2"][0]
    return ln(x + y)


# =============================================================================
if __name__ == "__main__":
    key = jax.random.PRNGKey(0)
    ks = jax.random.split(key, 12)

    def w(k, shape, scale=0.05):
        return (scale * jax.random.normal(k, shape)).astype(jnp.float32)

    params = {
        # Linear weights stored pre-transposed as (in, out)
        "wq": w(ks[0], (HID, HID)), "bq": w(ks[1], (1, HID)),
        "wk": w(ks[2], (HID, HID)), "bk": w(ks[3], (1, HID)),
        "wv": w(ks[4], (HID, HID)), "bv": w(ks[5], (1, HID)),
        "wo": w(ks[6], (HID, HID)), "bo": w(ks[7], (1, HID)),
        # Conv1d(k=1) weights folded to (in, out)
        "w1": w(ks[8], (HID, PF)),  "b1": w(ks[9], (1, PF)),
        "w2": w(ks[10], (PF, HID)), "b2": w(ks[11], (1, HID)),
        # LayerNorm (the same nn.LayerNorm module is applied twice in PyTorch)
        "ln_g": jnp.ones((1, HID), jnp.float32),
        "ln_b": jnp.zeros((1, HID), jnp.float32),
    }

    src = jax.random.normal(jax.random.PRNGKey(42), (BATCH, SEQ, HID), jnp.float32)
    # src_mask: (B, 1, S); 0 => key position masked; mask last 2 keys of batch 1
    src_mask = jnp.ones((BATCH, 1, SEQ), jnp.int32)
    src_mask = src_mask.at[1, 0, SEQ - 2:].set(0)

    out = encoder_layer(src, src_mask, params)
    out = jax.block_until_ready(out)

    ref = encoder_layer_ref(src, src_mask, params)
    # pl.reciprocal(approx=True) in the softmax introduces ~1e-4 rel. error
    assert jnp.allclose(out, ref, atol=3e-3, rtol=3e-3), \
        f"max abs err {jnp.max(jnp.abs(out - ref))}"

    print("KERNEL_OK")
</pallas_src>

<mosaic_0001>
module attributes {stable_mosaic.version = 11 : i64} {
  func.func @encoder_layer_kernel(%arg0: memref<16x32xf32, #tpu.memory_space<vmem>>, %arg1: memref<2x8xf32, #tpu.memory_space<vmem>>, %arg2: memref<32x96xf32, #tpu.memory_space<vmem>>, %arg3: memref<1x96xf32, #tpu.memory_space<vmem>>, %arg4: memref<32x32xf32, #tpu.memory_space<vmem>>, %arg5: memref<1x32xf32, #tpu.memory_space<vmem>>, %arg6: memref<32x64xf32, #tpu.memory_space<vmem>>, %arg7: memref<1x64xf32, #tpu.memory_space<vmem>>, %arg8: memref<64x32xf32, #tpu.memory_space<vmem>>, %arg9: memref<1x32xf32, #tpu.memory_space<vmem>>, %arg10: memref<1x32xf32, #tpu.memory_space<vmem>>, %arg11: memref<1x32xf32, #tpu.memory_space<vmem>>, %arg12: memref<16x32xf32, #tpu.memory_space<vmem>>) attributes {dimension_semantics = [], scalar_prefetch = 0 : i64, scratch_operands = 0 : i64, tpu.core_type = #tpu.core_type<tc>} {
    %c0 = arith.constant 0 : index
    %c0_0 = arith.constant 0 : index
    %0 = vector.load %arg0[%c0, %c0_0] : memref<16x32xf32, #tpu.memory_space<vmem>>, vector<16x32xf32>
    %c0_1 = arith.constant 0 : index
    %c0_2 = arith.constant 0 : index
    %1 = vector.load %arg2[%c0_1, %c0_2] : memref<32x96xf32, #tpu.memory_space<vmem>>, vector<32x96xf32>
    %cst = arith.constant dense<0.000000e+00> : vector<16x96xf32>
    %2 = tpu.matmul %0, %1, %cst {dimension_numbers = #tpu.dot_dimension_numbers<[1], [0], [0], [1], [0, 0, 1, 1], [], []>} : vector<16x32xf32>, vector<32x96xf32>, vector<16x96xf32> -> vector<16x96xf32>
    %c0_3 = arith.constant 0 : index
    %c0_4 = arith.constant 0 : index
    %3 = vector.load %arg3[%c0_3, %c0_4] : memref<1x96xf32, #tpu.memory_space<vmem>>, vector<1x96xf32>
    %4 = vector.broadcast %3 : vector<1x96xf32> to vector<16x96xf32>
    %5 = arith.addf %2, %4 : vector<16x96xf32>
    %6 = vector.extract_strided_slice %5 {offsets = [0, 0], sizes = [16, 32], strides = [1, 1]} : vector<16x96xf32> to vector<16x32xf32>
    %7 = vector.extract_strided_slice %5 {offsets = [0, 32], sizes = [16, 32], strides = [1, 1]} : vector<16x96xf32> to vector<16x32xf32>
    %8 = vector.extract_strided_slice %5 {offsets = [0, 64], sizes = [16, 32], strides = [1, 1]} : vector<16x96xf32> to vector<16x32xf32>
    %c0_5 = arith.constant 0 : index
    %c0_6 = arith.constant 0 : index
    %9 = vector.load %arg1[%c0_5, %c0_6] : memref<2x8xf32, #tpu.memory_space<vmem>>, vector<1x8xf32>
    %cst_7 = arith.constant 0.000000e+00 : f32
    %10 = vector.broadcast %cst_7 : f32 to vector<8x32xf32>
    %11 = vector.extract_strided_slice %6 {offsets = [0, 0], sizes = [8, 8], strides = [1, 1]} : vector<16x32xf32> to vector<8x8xf32>
    %12 = vector.extract_strided_slice %7 {offsets = [0, 0], sizes = [8, 8], strides = [1, 1]} : vector<16x32xf32> to vector<8x8xf32>
    %13 = vector.extract_strided_slice %8 {offsets = [0, 0], sizes = [8, 8], strides = [1, 1]} : vector<16x32xf32> to vector<8x8xf32>
    %cst_8 = arith.constant dense<0.000000e+00> : vector<8x8xf32>
    %14 = tpu.matmul %11, %12, %cst_8 {dimension_numbers = #tpu.dot_dimension_numbers<[1], [1], [0], [0], [0, 0, 1, 0], [], []>} : vector<8x8xf32>, vector<8x8xf32>, vector<8x8xf32> -> vector<8x8xf32>
    %cst_9 = arith.constant 0.353553385 : f32
    %15 = vector.broadcast %cst_9 : f32 to vector<8x8xf32>
    %16 = arith.mulf %14, %15 : vector<8x8xf32>
    %17 = vector.broadcast %9 : vector<1x8xf32> to vector<8x8xf32>
    %18 = arith.addf %16, %17 : vector<8x8xf32>
    %cst_10 = arith.constant dense<0xFF800000> : vector<8xf32>
    %19 = vector.multi_reduction <maximumf>, %18, %cst_10 [1] : vector<8x8xf32> to vector<8xf32>
    %20 = vector.shape_cast %19 : vector<8xf32> to vector<8x1xf32>
    %21 = vector.broadcast %20 : vector<8x1xf32> to vector<8x8xf32>
    %22 = arith.subf %18, %21 : vector<8x8xf32>
    %23 = math.exp %22 : vector<8x8xf32>
    %cst_11 = arith.constant dense<0.000000e+00> : vector<8xf32>
    %24 = vector.multi_reduction <add>, %23, %cst_11 [1] : vector<8x8xf32> to vector<8xf32>
    %25 = vector.shape_cast %24 : vector<8xf32> to vector<8x1xf32>
    %26 = tpu.reciprocal %25 {approx = true} : vector<8x1xf32> -> vector<8x1xf32>
    %27 = vector.broadcast %26 : vector<8x1xf32> to vector<8x8xf32>
    %28 = arith.mulf %23, %27 : vector<8x8xf32>
    %cst_12 = arith.constant dense<0.000000e+00> : vector<8x8xf32>
    %29 = tpu.matmul %28, %13, %cst_12 {dimension_numbers = #tpu.dot_dimension_numbers<[1], [0], [0], [1], [0, 0, 1, 1], [], []>} : vector<8x8xf32>, vector<8x8xf32>, vector<8x8xf32> -> vector<8x8xf32>
    %c0_13 = arith.constant 0 : index
    %c0_14 = arith.constant 0 : index
    %30 = vector.load %arg4[%c0_13, %c0_14] : memref<32x32xf32, #tpu.memory_space<vmem>>, vector<8x32xf32>
    %cst_15 = arith.constant dense<0.000000e+00> : vector<8x32xf32>
    %31 = tpu.matmul %29, %30, %cst_15 {dimension_numbers = #tpu.dot_dimension_numbers<[1], [0], [0], [1], [0, 0, 1, 1], [], []>} : vector<8x8xf32>, vector<8x32xf32>, vector<8x32xf32> -> vector<8x32xf32>
    %32 = arith.addf %10, %31 : vector<8x32xf32>
    %33 = vector.extract_strided_slice %6 {offsets = [0, 8], sizes = [8, 8], strides = [1, 1]} : vector<16x32xf32> to vector<8x8xf32>
    %34 = vector.extract_strided_slice %7 {offsets = [0, 8], sizes = [8, 8], strides = [1, 1]} : vector<16x32xf32> to vector<8x8xf32>
    %35 = vector.extract_strided_slice %8 {offsets = [0, 8], sizes = [8, 8], strides = [1, 1]} : vector<16x32xf32> to vector<8x8xf32>
    %cst_16 = arith.constant dense<0.000000e+00> : vector<8x8xf32>
    %36 = tpu.matmul %33, %34, %cst_16 {dimension_numbers = #tpu.dot_dimension_numbers<[1], [1], [0], [0], [0, 0, 1, 0], [], []>} : vector<8x8xf32>, vector<8x8xf32>, vector<8x8xf32> -> vector<8x8xf32>
    %cst_17 = arith.constant 0.353553385 : f32
    %37 = vector.broadcast %cst_17 : f32 to vector<8x8xf32>
    %38 = arith.mulf %36, %37 : vector<8x8xf32>
    %39 = vector.broadcast %9 : vector<1x8xf32> to vector<8x8xf32>
    %40 = arith.addf %38, %39 : vector<8x8xf32>
    %cst_18 = arith.constant dense<0xFF800000> : vector<8xf32>
    %41 = vector.multi_reduction <maximumf>, %40, %cst_18 [1] : vector<8x8xf32> to vector<8xf32>
    %42 = vector.shape_cast %41 : vector<8xf32> to vector<8x1xf32>
    %43 = vector.broadcast %42 : vector<8x1xf32> to vector<8x8xf32>
    %44 = arith.subf %40, %43 : vector<8x8xf32>
    %45 = math.exp %44 : vector<8x8xf32>
    %cst_19 = arith.constant dense<0.000000e+00> : vector<8xf32>
    %46 = vector.multi_reduction <add>, %45, %cst_19 [1] : vector<8x8xf32> to vector<8xf32>
    %47 = vector.shape_cast %46 : vector<8xf32> to vector<8x1xf32>
    %48 = tpu.reciprocal %47 {approx = true} : vector<8x1xf32> -> vector<8x1xf32>
    %49 = vector.broadcast %48 : vector<8x1xf32> to vector<8x8xf32>
    %50 = arith.mulf %45, %49 : vector<8x8xf32>
    %cst_20 = arith.constant dense<0.000000e+00> : vector<8x8xf32>
    %51 = tpu.matmul %50, %35, %cst_20 {dimension_numbers = #tpu.dot_dimension_numbers<[1], [0], [0], [1], [0, 0, 1, 1], [], []>} : vector<8x8xf32>, vector<8x8xf32>, vector<8x8xf32> -> vector<8x8xf32>
    %c8 = arith.constant 8 : index
    %c0_21 = arith.constant 0 : index
    %52 = vector.load %arg4[%c8, %c0_21] : memref<32x32xf32, #tpu.memory_space<vmem>>, vector<8x32xf32>
    %cst_22 = arith.constant dense<0.000000e+00> : vector<8x32xf32>
    %53 = tpu.matmul %51, %52, %cst_22 {dimension_numbers = #tpu.dot_dimension_numbers<[1], [0], [0], [1], [0, 0, 1, 1], [], []>} : vector<8x8xf32>, vector<8x32xf32>, vector<8x32xf32> -> vector<8x32xf32>
    %54 = arith.addf %32, %53 : vector<8x32xf32>
    %55 = vector.extract_strided_slice %6 {offsets = [0, 16], sizes = [8, 8], strides = [1, 1]} : vector<16x32xf32> to vector<8x8xf32>
    %56 = vector.extract_strided_slice %7 {offsets = [0, 16], sizes = [8, 8], strides = [1, 1]} : vector<16x32xf32> to vector<8x8xf32>
    %57 = vector.extract_strided_slice %8 {offsets = [0, 16], sizes = [8, 8], strides = [1, 1]} : vector<16x32xf32> to vector<8x8xf32>
    %cst_23 = arith.constant dense<0.000000e+00> : vector<8x8xf32>
    %58 = tpu.matmul %55, %56, %cst_23 {dimension_numbers = #tpu.dot_dimension_numbers<[1], [1], [0], [0], [0, 0, 1, 0], [], []>} : vector<8x8xf32>, vector<8x8xf32>, vector<8x8xf32> -> vector<8x8xf32>
    %cst_24 = arith.constant 0.353553385 : f32
    %59 = vector.broadcast %cst_24 : f32 to vector<8x8xf32>
    %60 = arith.mulf %58, %59 : vector<8x8xf32>
    %61 = vector.broadcast %9 : vector<1x8xf32> to vector<8x8xf32>
    %62 = arith.addf %60, %61 : vector<8x8xf32>
    %cst_25 = arith.constant dense<0xFF800000> : vector<8xf32>
    %63 = vector.multi_reduction <maximumf>, %62, %cst_25 [1] : vector<8x8xf32> to vector<8xf32>
    %64 = vector.shape_cast %63 : vector<8xf32> to vector<8x1xf32>
    %65 = vector.broadcast %64 : vector<8x1xf32> to vector<8x8xf32>
    %66 = arith.subf %62, %65 : vector<8x8xf32>
    %67 = math.exp %66 : vector<8x8xf32>
    %cst_26 = arith.constant dense<0.000000e+00> : vector<8xf32>
    %68 = vector.multi_reduction <add>, %67, %cst_26 [1] : vector<8x8xf32> to vector<8xf32>
    %69 = vector.shape_cast %68 : vector<8xf32> to vector<8x1xf32>
    %70 = tpu.reciprocal %69 {approx = true} : vector<8x1xf32> -> vector<8x1xf32>
    %71 = vector.broadcast %70 : vector<8x1xf32> to vector<8x8xf32>
    %72 = arith.mulf %67, %71 : vector<8x8xf32>
    %cst_27 = arith.constant dense<0.000000e+00> : vector<8x8xf32>
    %73 = tpu.matmul %72, %57, %cst_27 {dimension_numbers = #tpu.dot_dimension_numbers<[1], [0], [0], [1], [0, 0, 1, 1], [], []>} : vector<8x8xf32>, vector<8x8xf32>, vector<8x8xf32> -> vector<8x8xf32>
    %c16 = arith.constant 16 : index
    %c0_28 = arith.constant 0 : index
    %74 = vector.load %arg4[%c16, %c0_28] : memref<32x32xf32, #tpu.memory_space<vmem>>, vector<8x32xf32>
    %cst_29 = arith.constant dense<0.000000e+00> : vector<8x32xf32>
    %75 = tpu.matmul %73, %74, %cst_29 {dimension_numbers = #tpu.dot_dimension_numbers<[1], [0], [0], [1], [0, 0, 1, 1], [], []>} : vector<8x8xf32>, vector<8x32xf32>, vector<8x32xf32> -> vector<8x32xf32>
    %76 = arith.addf %54, %75 : vector<8x32xf32>
    %77 = vector.extract_strided_slice %6 {offsets = [0, 24], sizes = [8, 8], strides = [1, 1]} : vector<16x32xf32> to vector<8x8xf32>
    %78 = vector.extract_strided_slice %7 {offsets = [0, 24], sizes = [8, 8], strides = [1, 1]} : vector<16x32xf32> to vector<8x8xf32>
    %79 = vector.extract_strided_slice %8 {offsets = [0, 24], sizes = [8, 8], strides = [1, 1]} : vector<16x32xf32> to vector<8x8xf32>
    %cst_30 = arith.constant dense<0.000000e+00> : vector<8x8xf32>
    %80 = tpu.matmul %77, %78, %cst_30 {dimension_numbers = #tpu.dot_dimension_numbers<[1], [1], [0], [0], [0, 0, 1, 0], [], []>} : vector<8x8xf32>, vector<8x8xf32>, vector<8x8xf32> -> vector<8x8xf32>
    %cst_31 = arith.constant 0.353553385 : f32
    %81 = vector.broadcast %cst_31 : f32 to vector<8x8xf32>
    %82 = arith.mulf %80, %81 : vector<8x8xf32>
    %83 = vector.broadcast %9 : vector<1x8xf32> to vector<8x8xf32>
    %84 = arith.addf %82, %83 : vector<8x8xf32>
    %cst_32 = arith.constant dense<0xFF800000> : vector<8xf32>
    %85 = vector.multi_reduction <maximumf>, %84, %cst_32 [1] : vector<8x8xf32> to vector<8xf32>
    %86 = vector.shape_cast %85 : vector<8xf32> to vector<8x1xf32>
    %87 = vector.broadcast %86 : vector<8x1xf32> to vector<8x8xf32>
    %88 = arith.subf %84, %87 : vector<8x8xf32>
    %89 = math.exp %88 : vector<8x8xf32>
    %cst_33 = arith.constant dense<0.000000e+00> : vector<8xf32>
    %90 = vector.multi_reduction <add>, %89, %cst_33 [1] : vector<8x8xf32> to vector<8xf32>
    %91 = vector.shape_cast %90 : vector<8xf32> to vector<8x1xf32>
    %92 = tpu.reciprocal %91 {approx = true} : vector<8x1xf32> -> vector<8x1xf32>
    %93 = vector.broadcast %92 : vector<8x1xf32> to vector<8x8xf32>
    %94 = arith.mulf %89, %93 : vector<8x8xf32>
    %cst_34 = arith.constant dense<0.000000e+00> : vector<8x8xf32>
    %95 = tpu.matmul %94, %79, %cst_34 {dimension_numbers = #tpu.dot_dimension_numbers<[1], [0], [0], [1], [0, 0, 1, 1], [], []>} : vector<8x8xf32>, vector<8x8xf32>, vector<8x8xf32> -> vector<8x8xf32>
    %c24 = arith.constant 24 : index
    %c0_35 = arith.constant 0 : index
    %96 = vector.load %arg4[%c24, %c0_35] : memref<32x32xf32, #tpu.memory_space<vmem>>, vector<8x32xf32>
    %cst_36 = arith.constant dense<0.000000e+00> : vector<8x32xf32>
    %97 = tpu.matmul %95, %96, %cst_36 {dimension_numbers = #tpu.dot_dimension_numbers<[1], [0], [0], [1], [0, 0, 1, 1], [], []>} : vector<8x8xf32>, vector<8x32xf32>, vector<8x32xf32> -> vector<8x32xf32>
    %98 = arith.addf %76, %97 : vector<8x32xf32>
    %c0_37 = arith.constant 0 : index
    %c0_38 = arith.constant 0 : index
    %99 = vector.load %arg5[%c0_37, %c0_38] : memref<1x32xf32, #tpu.memory_space<vmem>>, vector<1x32xf32>
    %100 = vector.broadcast %99 : vector<1x32xf32> to vector<8x32xf32>
    %101 = arith.addf %98, %100 : vector<8x32xf32>
    %c1 = arith.constant 1 : index
    %c0_39 = arith.constant 0 : index
    %102 = vector.load %arg1[%c1, %c0_39] : memref<2x8xf32, #tpu.memory_space<vmem>>, vector<1x8xf32>
    %cst_40 = arith.constant 0.000000e+00 : f32
    %103 = vector.broadcast %cst_40 : f32 to vector<8x32xf32>
    %104 = vector.extract_strided_slice %6 {offsets = [8, 0], sizes = [8, 8], strides = [1, 1]} : vector<16x32xf32> to vector<8x8xf32>
    %105 = vector.extract_strided_slice %7 {offsets = [8, 0], sizes = [8, 8], strides = [1, 1]} : vector<16x32xf32> to vector<8x8xf32>
    %106 = vector.extract_strided_slice %8 {offsets = [8, 0], sizes = [8, 8], strides = [1, 1]} : vector<16x32xf32> to vector<8x8xf32>
    %cst_41 = arith.constant dense<0.000000e+00> : vector<8x8xf32>
    %107 = tpu.matmul %104, %105, %cst_41 {dimension_numbers = #tpu.dot_dimension_numbers<[1], [1], [0], [0], [0, 0, 1, 0], [], []>} : vector<8x8xf32>, vector<8x8xf32>, vector<8x8xf32> -> vector<8x8xf32>
    %cst_42 = arith.constant 0.353553385 : f32
    %108 = vector.broadcast %cst_42 : f32 to vector<8x8xf32>
    %109 = arith.mulf %107, %108 : vector<8x8xf32>
    %110 = vector.broadcast %102 : vector<1x8xf32> to vector<8x8xf32>
    %111 = arith.addf %109, %110 : vector<8x8xf32>
    %cst_43 = arith.constant dense<0xFF800000> : vector<8xf32>
    %112 = vector.multi_reduction <maximumf>, %111, %cst_43 [1] : vector<8x8xf32> to vector<8xf32>
    %113 = vector.shape_cast %112 : vector<8xf32> to vector<8x1xf32>
    %114 = vector.broadcast %113 : vector<8x1xf32> to vector<8x8xf32>
    %115 = arith.subf %111, %114 : vector<8x8xf32>
    %116 = math.exp %115 : vector<8x8xf32>
    %cst_44 = arith.constant dense<0.000000e+00> : vector<8xf32>
    %117 = vector.multi_reduction <add>, %116, %cst_44 [1] : vector<8x8xf32> to vector<8xf32>
    %118 = vector.shape_cast %117 : vector<8xf32> to vector<8x1xf32>
    %119 = tpu.reciprocal %118 {approx = true} : vector<8x1xf32> -> vector<8x1xf32>
    %120 = vector.broadcast %119 : vector<8x1xf32> to vector<8x8xf32>
    %121 = arith.mulf %116, %120 : vector<8x8xf32>
    %cst_45 = arith.constant dense<0.000000e+00> : vector<8x8xf32>
    %122 = tpu.matmul %121, %106, %cst_45 {dimension_numbers = #tpu.dot_dimension_numbers<[1], [0], [0], [1], [0, 0, 1, 1], [], []>} : vector<8x8xf32>, vector<8x8xf32>, vector<8x8xf32> -> vector<8x8xf32>
    %c0_46 = arith.constant 0 : index
    %c0_47 = arith.constant 0 : index
    %123 = vector.load %arg4[%c0_46, %c0_47] : memref<32x32xf32, #tpu.memory_space<vmem>>, vector<8x32xf32>
    %cst_48 = arith.constant dense<0.000000e+00> : vector<8x32xf32>
    %124 = tpu.matmul %122, %123, %cst_48 {dimension_numbers = #tpu.dot_dimension_numbers<[1], [0], [0], [1], [0, 0, 1, 1], [], []>} : vector<8x8xf32>, vector<8x32xf32>, vector<8x32xf32> -> vector<8x32xf32>
    %125 = arith.addf %103, %124 : vector<8x32xf32>
    %126 = vector.extract_strided_slice %6 {offsets = [8, 8], sizes = [8, 8], strides = [1, 1]} : vector<16x32xf32> to vector<8x8xf32>
    %127 = vector.extract_strided_slice %7 {offsets = [8, 8], sizes = [8, 8], strides = [1, 1]} : vector<16x32xf32> to vector<8x8xf32>
    %128 = vector.extract_strided_slice %8 {offsets = [8, 8], sizes = [8, 8], strides = [1, 1]} : vector<16x32xf32> to vector<8x8xf32>
    %cst_49 = arith.constant dense<0.000000e+00> : vector<8x8xf32>
    %129 = tpu.matmul %126, %127, %cst_49 {dimension_numbers = #tpu.dot_dimension_numbers<[1], [1], [0], [0], [0, 0, 1, 0], [], []>} : vector<8x8xf32>, vector<8x8xf32>, vector<8x8xf32> -> vector<8x8xf32>
    %cst_50 = arith.constant 0.353553385 : f32
    %130 = vector.broadcast %cst_50 : f32 to vector<8x8xf32>
    %131 = arith.mulf %129, %130 : vector<8x8xf32>
    %132 = vector.broadcast %102 : vector<1x8xf32> to vector<8x8xf32>
    %133 = arith.addf %131, %132 : vector<8x8xf32>
    %cst_51 = arith.constant dense<0xFF800000> : vector<8xf32>
    %134 = vector.multi_reduction <maximumf>, %133, %cst_51 [1] : vector<8x8xf32> to vector<8xf32>
    %135 = vector.shape_cast %134 : vector<8xf32> to vector<8x1xf32>
    %136 = vector.broadcast %135 : vector<8x1xf32> to vector<8x8xf32>
    %137 = arith.subf %133, %136 : vector<8x8xf32>
    %138 = math.exp %137 : vector<8x8xf32>
    %cst_52 = arith.constant dense<0.000000e+00> : vector<8xf32>
    %139 = vector.multi_reduction <add>, %138, %cst_52 [1] : vector<8x8xf32> to vector<8xf32>
    %140 = vector.shape_cast %139 : vector<8xf32> to vector<8x1xf32>
    %141 = tpu.reciprocal %140 {approx = true} : vector<8x1xf32> -> vector<8x1xf32>
    %142 = vector.broadcast %141 : vector<8x1xf32> to vector<8x8xf32>
    %143 = arith.mulf %138, %142 : vector<8x8xf32>
    %cst_53 = arith.constant dense<0.000000e+00> : vector<8x8xf32>
    %144 = tpu.matmul %143, %128, %cst_53 {dimension_numbers = #tpu.dot_dimension_numbers<[1], [0], [0], [1], [0, 0, 1, 1], [], []>} : vector<8x8xf32>, vector<8x8xf32>, vector<8x8xf32> -> vector<8x8xf32>
    %c8_54 = arith.constant 8 : index
    %c0_55 = arith.constant 0 : index
    %145 = vector.load %arg4[%c8_54, %c0_55] : memref<32x32xf32, #tpu.memory_space<vmem>>, vector<8x32xf32>
    %cst_56 = arith.constant dense<0.000000e+00> : vector<8x32xf32>
    %146 = tpu.matmul %144, %145, %cst_56 {dimension_numbers = #tpu.dot_dimension_numbers<[1], [0], [0], [1], [0, 0, 1, 1], [], []>} : vector<8x8xf32>, vector<8x32xf32>, vector<8x32xf32> -> vector<8x32xf32>
    %147 = arith.addf %125, %146 : vector<8x32xf32>
    %148 = vector.extract_strided_slice %6 {offsets = [8, 16], sizes = [8, 8], strides = [1, 1]} : vector<16x32xf32> to vector<8x8xf32>
    %149 = vector.extract_strided_slice %7 {offsets = [8, 16], sizes = [8, 8], strides = [1, 1]} : vector<16x32xf32> to vector<8x8xf32>
    %150 = vector.extract_strided_slice %8 {offsets = [8, 16], sizes = [8, 8], strides = [1, 1]} : vector<16x32xf32> to vector<8x8xf32>
    %cst_57 = arith.constant dense<0.000000e+00> : vector<8x8xf32>
    %151 = tpu.matmul %148, %149, %cst_57 {dimension_numbers = #tpu.dot_dimension_numbers<[1], [1], [0], [0], [0, 0, 1, 0], [], []>} : vector<8x8xf32>, vector<8x8xf32>, vector<8x8xf32> -> vector<8x8xf32>
    %cst_58 = arith.constant 0.353553385 : f32
    %152 = vector.broadcast %cst_58 : f32 to vector<8x8xf32>
    %153 = arith.mulf %151, %152 : vector<8x8xf32>
    %154 = vector.broadcast %102 : vector<1x8xf32> to vector<8x8xf32>
    %155 = arith.addf %153, %154 : vector<8x8xf32>
    %cst_59 = arith.constant dense<0xFF800000> : vector<8xf32>
    %156 = vector.multi_reduction <maximumf>, %155, %cst_59 [1] : vector<8x8xf32> to vector<8xf32>
    %157 = vector.shape_cast %156 : vector<8xf32> to vector<8x1xf32>
    %158 = vector.broadcast %157 : vector<8x1xf32> to vector<8x8xf32>
    %159 = arith.subf %155, %158 : vector<8x8xf32>
    %160 = math.exp %159 : vector<8x8xf32>
    %cst_60 = arith.constant dense<0.000000e+00> : vector<8xf32>
    %161 = vector.multi_reduction <add>, %160, %cst_60 [1] : vector<8x8xf32> to vector<8xf32>
    %162 = vector.shape_cast %161 : vector<8xf32> to vector<8x1xf32>
    %163 = tpu.reciprocal %162 {approx = true} : vector<8x1xf32> -> vector<8x1xf32>
    %164 = vector.broadcast %163 : vector<8x1xf32> to vector<8x8xf32>
    %165 = arith.mulf %160, %164 : vector<8x8xf32>
    %cst_61 = arith.constant dense<0.000000e+00> : vector<8x8xf32>
    %166 = tpu.matmul %165, %150, %cst_61 {dimension_numbers = #tpu.dot_dimension_numbers<[1], [0], [0], [1], [0, 0, 1, 1], [], []>} : vector<8x8xf32>, vector<8x8xf32>, vector<8x8xf32> -> vector<8x8xf32>
    %c16_62 = arith.constant 16 : index
    %c0_63 = arith.constant 0 : index
    %167 = vector.load %arg4[%c16_62, %c0_63] : memref<32x32xf32, #tpu.memory_space<vmem>>, vector<8x32xf32>
    %cst_64 = arith.constant dense<0.000000e+00> : vector<8x32xf32>
    %168 = tpu.matmul %166, %167, %cst_64 {dimension_numbers = #tpu.dot_dimension_numbers<[1], [0], [0], [1], [0, 0, 1, 1], [], []>} : vector<8x8xf32>, vector<8x32xf32>, vector<8x32xf32> -> vector<8x32xf32>
    %169 = arith.addf %147, %168 : vector<8x32xf32>
    %170 = vector.extract_strided_slice %6 {offsets = [8, 24], sizes = [8, 8], strides = [1, 1]} : vector<16x32xf32> to vector<8x8xf32>
    %171 = vector.extract_strided_slice %7 {offsets = [8, 24], sizes = [8, 8], strides = [1, 1]} : vector<16x32xf32> to vector<8x8xf32>
    %172 = vector.extract_strided_slice %8 {offsets = [8, 24], sizes = [8, 8], strides = [1, 1]} : vector<16x32xf32> to vector<8x8xf32>
    %cst_65 = arith.constant dense<0.000000e+00> : vector<8x8xf32>
    %173 = tpu.matmul %170, %171, %cst_65 {dimension_numbers = #tpu.dot_dimension_numbers<[1], [1], [0], [0], [0, 0, 1, 0], [], []>} : vector<8x8xf32>, vector<8x8xf32>, vector<8x8xf32> -> vector<8x8xf32>
    %cst_66 = arith.constant 0.353553385 : f32
    %174 = vector.broadcast %cst_66 : f32 to vector<8x8xf32>
    %175 = arith.mulf %173, %174 : vector<8x8xf32>
    %176 = vector.broadcast %102 : vector<1x8xf32> to vector<8x8xf32>
    %177 = arith.addf %175, %176 : vector<8x8xf32>
    %cst_67 = arith.constant dense<0xFF800000> : vector<8xf32>
    %178 = vector.multi_reduction <maximumf>, %177, %cst_67 [1] : vector<8x8xf32> to vector<8xf32>
    %179 = vector.shape_cast %178 : vector<8xf32> to vector<8x1xf32>
    %180 = vector.broadcast %179 : vector<8x1xf32> to vector<8x8xf32>
    %181 = arith.subf %177, %180 : vector<8x8xf32>
    %182 = math.exp %181 : vector<8x8xf32>
    %cst_68 = arith.constant dense<0.000000e+00> : vector<8xf32>
    %183 = vector.multi_reduction <add>, %182, %cst_68 [1] : vector<8x8xf32> to vector<8xf32>
    %184 = vector.shape_cast %183 : vector<8xf32> to vector<8x1xf32>
    %185 = tpu.reciprocal %184 {approx = true} : vector<8x1xf32> -> vector<8x1xf32>
    %186 = vector.broadcast %185 : vector<8x1xf32> to vector<8x8xf32>
    %187 = arith.mulf %182, %186 : vector<8x8xf32>
    %cst_69 = arith.constant dense<0.000000e+00> : vector<8x8xf32>
    %188 = tpu.matmul %187, %172, %cst_69 {dimension_numbers = #tpu.dot_dimension_numbers<[1], [0], [0], [1], [0, 0, 1, 1], [], []>} : vector<8x8xf32>, vector<8x8xf32>, vector<8x8xf32> -> vector<8x8xf32>
    %c24_70 = arith.constant 24 : index
    %c0_71 = arith.constant 0 : index
    %189 = vector.load %arg4[%c24_70, %c0_71] : memref<32x32xf32, #tpu.memory_space<vmem>>, vector<8x32xf32>
    %cst_72 = arith.constant dense<0.000000e+00> : vector<8x32xf32>
    %190 = tpu.matmul %188, %189, %cst_72 {dimension_numbers = #tpu.dot_dimension_numbers<[1], [0], [0], [1], [0, 0, 1, 1], [], []>} : vector<8x8xf32>, vector<8x32xf32>, vector<8x32xf32> -> vector<8x32xf32>
    %191 = arith.addf %169, %190 : vector<8x32xf32>
    %c0_73 = arith.constant 0 : index
    %c0_74 = arith.constant 0 : index
    %192 = vector.load %arg5[%c0_73, %c0_74] : memref<1x32xf32, #tpu.memory_space<vmem>>, vector<1x32xf32>
    %193 = vector.broadcast %192 : vector<1x32xf32> to vector<8x32xf32>
    %194 = arith.addf %191, %193 : vector<8x32xf32>
    %195 = tpu.concatenate %101, %194 in 0 : vector<8x32xf32>, vector<8x32xf32> -> vector<16x32xf32>
    %196 = arith.addf %0, %195 : vector<16x32xf32>
    %cst_75 = arith.constant dense<0.000000e+00> : vector<16xf32>
    %197 = vector.multi_reduction <add>, %196, %cst_75 [1] : vector<16x32xf32> to vector<16xf32>
    %198 = vector.shape_cast %197 : vector<16xf32> to vector<16x1xf32>
    %cst_76 = arith.constant 3.200000e+01 : f32
    %199 = vector.broadcast %cst_76 : f32 to vector<16x1xf32>
    %200 = arith.divf %198, %199 : vector<16x1xf32>
    %201 = vector.broadcast %200 : vector<16x1xf32> to vector<16x32xf32>
    %202 = arith.subf %196, %201 : vector<16x32xf32>
    %203 = arith.mulf %202, %202 : vector<16x32xf32>
    %cst_77 = arith.constant dense<0.000000e+00> : vector<16xf32>
    %204 = vector.multi_reduction <add>, %203, %cst_77 [1] : vector<16x32xf32> to vector<16xf32>
    %205 = vector.shape_cast %204 : vector<16xf32> to vector<16x1xf32>
    %cst_78 = arith.constant 3.200000e+01 : f32
    %206 = vector.broadcast %cst_78 : f32 to vector<16x1xf32>
    %207 = arith.divf %205, %206 : vector<16x1xf32>
    %208 = vector.broadcast %200 : vector<16x1xf32> to vector<16x32xf32>
    %209 = arith.subf %196, %208 : vector<16x32xf32>
    %cst_79 = arith.constant 9.99999974E-6 : f32
    %210 = vector.broadcast %cst_79 : f32 to vector<16x1xf32>
    %211 = arith.addf %207, %210 : vector<16x1xf32>
    %212 = math.rsqrt %211 : vector<16x1xf32>
    %213 = vector.broadcast %212 : vector<16x1xf32> to vector<16x32xf32>
    %214 = arith.mulf %209, %213 : vector<16x32xf32>
    %c0_80 = arith.constant 0 : index
    %c0_81 = arith.constant 0 : index
    %215 = vector.load %arg10[%c0_80, %c0_81] : memref<1x32xf32, #tpu.memory_space<vmem>>, vector<1x32xf32>
    %216 = vector.broadcast %215 : vector<1x32xf32> to vector<16x32xf32>
    %217 = arith.mulf %214, %216 : vector<16x32xf32>
    %c0_82 = arith.constant 0 : index
    %c0_83 = arith.constant 0 : index
    %218 = vector.load %arg11[%c0_82, %c0_83] : memref<1x32xf32, #tpu.memory_space<vmem>>, vector<1x32xf32>
    %219 = vector.broadcast %218 : vector<1x32xf32> to vector<16x32xf32>
    %220 = arith.addf %217, %219 : vector<16x32xf32>
    %c0_84 = arith.constant 0 : index
    %c0_85 = arith.constant 0 : index
    %221 = vector.load %arg6[%c0_84, %c0_85] : memref<32x64xf32, #tpu.memory_space<vmem>>, vector<32x64xf32>
    %cst_86 = arith.constant dense<0.000000e+00> : vector<16x64xf32>
    %222 = tpu.matmul %220, %221, %cst_86 {dimension_numbers = #tpu.dot_dimension_numbers<[1], [0], [0], [1], [0, 0, 1, 1], [], []>} : vector<16x32xf32>, vector<32x64xf32>, vector<16x64xf32> -> vector<16x64xf32>
    %c0_87 = arith.constant 0 : index
    %c0_88 = arith.constant 0 : index
    %223 = vector.load %arg7[%c0_87, %c0_88] : memref<1x64xf32, #tpu.memory_space<vmem>>, vector<1x64xf32>
    %224 = vector.broadcast %223 : vector<1x64xf32> to vector<16x64xf32>
    %225 = arith.addf %222, %224 : vector<16x64xf32>
    %cst_89 = arith.constant 0.000000e+00 : f32
    %226 = vector.broadcast %cst_89 : f32 to vector<16x64xf32>
    %227 = arith.maximumf %225, %226 : vector<16x64xf32>
    %c0_90 = arith.constant 0 : index
    %c0_91 = arith.constant 0 : index
    %228 = vector.load %arg8[%c0_90, %c0_91] : memref<64x32xf32, #tpu.memory_space<vmem>>, vector<64x32xf32>
    %cst_92 = arith.constant dense<0.000000e+00> : vector<16x32xf32>
    %229 = tpu.matmul %227, %228, %cst_92 {dimension_numbers = #tpu.dot_dimension_numbers<[1], [0], [0], [1], [0, 0, 1, 1], [], []>} : vector<16x64xf32>, vector<64x32xf32>, vector<16x32xf32> -> vector<16x32xf32>
    %c0_93 = arith.constant 0 : index
    %c0_94 = arith.constant 0 : index
    %230 = vector.load %arg9[%c0_93, %c0_94] : memref<1x32xf32, #tpu.memory_space<vmem>>, vector<1x32xf32>
    %231 = vector.broadcast %230 : vector<1x32xf32> to vector<16x32xf32>
    %232 = arith.addf %229, %231 : vector<16x32xf32>
    %233 = arith.addf %220, %232 : vector<16x32xf32>
    %cst_95 = arith.constant dense<0.000000e+00> : vector<16xf32>
    %234 = vector.multi_reduction <add>, %233, %cst_95 [1] : vector<16x32xf32> to vector<16xf32>
    %235 = vector.shape_cast %234 : vector<16xf32> to vector<16x1xf32>
    %cst_96 = arith.constant 3.200000e+01 : f32
    %236 = vector.broadcast %cst_96 : f32 to vector<16x1xf32>
    %237 = arith.divf %235, %236 : vector<16x1xf32>
    %238 = vector.broadcast %237 : vector<16x1xf32> to vector<16x32xf32>
    %239 = arith.subf %233, %238 : vector<16x32xf32>
    %240 = arith.mulf %239, %239 : vector<16x32xf32>
    %cst_97 = arith.constant dense<0.000000e+00> : vector<16xf32>
    %241 = vector.multi_reduction <add>, %240, %cst_97 [1] : vector<16x32xf32> to vector<16xf32>
    %242 = vector.shape_cast %241 : vector<16xf32> to vector<16x1xf32>
    %cst_98 = arith.constant 3.200000e+01 : f32
    %243 = vector.broadcast %cst_98 : f32 to vector<16x1xf32>
    %244 = arith.divf %242, %243 : vector<16x1xf32>
    %245 = vector.broadcast %237 : vector<16x1xf32> to vector<16x32xf32>
    %246 = arith.subf %233, %245 : vector<16x32xf32>
    %cst_99 = arith.constant 9.99999974E-6 : f32
    %247 = vector.broadcast %cst_99 : f32 to vector<16x1xf32>
    %248 = arith.addf %244, %247 : vector<16x1xf32>
    %249 = math.rsqrt %248 : vector<16x1xf32>
    %250 = vector.broadcast %249 : vector<16x1xf32> to vector<16x32xf32>
    %251 = arith.mulf %246, %250 : vector<16x32xf32>
    %c0_100 = arith.constant 0 : index
    %c0_101 = arith.constant 0 : index
    %252 = vector.load %arg10[%c0_100, %c0_101] : memref<1x32xf32, #tpu.memory_space<vmem>>, vector<1x32xf32>
    %253 = vector.broadcast %252 : vector<1x32xf32> to vector<16x32xf32>
    %254 = arith.mulf %251, %253 : vector<16x32xf32>
    %c0_102 = arith.constant 0 : index
    %c0_103 = arith.constant 0 : index
    %255 = vector.load %arg11[%c0_102, %c0_103] : memref<1x32xf32, #tpu.memory_space<vmem>>, vector<1x32xf32>
    %256 = vector.broadcast %255 : vector<1x32xf32> to vector<16x32xf32>
    %257 = arith.addf %254, %256 : vector<16x32xf32>
    %c0_104 = arith.constant 0 : index
    %c0_105 = arith.constant 0 : index
    %258 = vector.load %arg12[%c0_104, %c0_105] : memref<16x32xf32, #tpu.memory_space<vmem>>, vector<16x32xf32>
    tpu.vector_store %arg12[%c0_104, %c0_105], %257 {strides = array<i32>} : memref<16x32xf32, #tpu.memory_space<vmem>>, vector<16x32xf32>,
    return
  }
}

</mosaic_0001>

<bundles_post_ra>
// kernel: tpu_custom_call.1
= control target key start
LH: loop header
LB: loop body
LE: loop exit
PB: predicated region body
PF: predicated region fallthrough
CT: control target
= control target key end

     0   :  { %17 = vsyncpa [#allocation3], 0  ;;  %s3237_s0 = inlined_call_operand.hbm [shape: f32[16,32], index: 0, kind: input, shape index: {}]   ;;  %s3238_s1 = inlined_call_operand.vmem [shape: f32[2,8], index: 1, kind: input, shape index: {}]   ;;  %s3239_s2 = inlined_call_operand.vmem [shape: f32[32,96], index: 2, kind: input, shape index: {}]   ;;  %s3240_s3 = inlined_call_operand.vmem [shape: f32[1,96], index: 3, kind: input, shape index: {}]   ;;  %s3241_s4 = inlined_call_operand.vmem [shape: f32[32,32], index: 4, kind: input, shape index: {}]   ;;  %s3242_s5 = inlined_call_operand.vmem [shape: f32[1,32], index: 5, kind: input, shape index: {}]   ;;  %s3243_s6 = inlined_call_operand.vmem [shape: f32[32,64], index: 6, kind: input, shape index: {}]   ;;  %s3244_s7 = inlined_call_operand.vmem [shape: f32[1,64], index: 7, kind: input, shape index: {}]   ;;  %s3245_s8 = inlined_call_operand.vmem [shape: f32[64,32], index: 8, kind: input, shape index: {}]   ;;  %s3246_s9 = inlined_call_operand.vmem [shape: f32[1,32], index: 9, kind: input, shape index: {}]   ;;  %s3247_s10 = inlined_call_operand.vmem [shape: f32[1,32], index: 10, kind: input, shape index: {}]   ;;  %s3248_s11 = inlined_call_operand.vmem [shape: f32[1,32], index: 11, kind: input, shape index: {}]   ;;  %s3249_s12 = inlined_call_operand.hbm [shape: f32[16,32], index: 12, kind: output, shape index: {}]  }
   0x1   :  { %18 = vsyncpa [#allocation4], 0  ;;  %s2800_s21 = smov [#allocation2]   ;;  %s2752_s25 = scalar_lea.hbm %s3237_s0, 256 }
   0x2   :  { %s24_s22 = sshll.u32 %s2800_s21, 4  ;;  %p2753_p0 = scmp.ne.s32.totalorder %s3237_s0, %s2752_s25  ;;  %s25_s22 = int_to_ptr.vmem [resolvable:$true] %s24_s22 }
   0x3   :  { %p2756_p1 = scmp.lt.u32.totalorder %s2752_s25, %s3237_s0 }
   0x5   :  { %p2758_p2 = pnand %p2756_p1, %p2753_p0 }
   0x7   :  { %2761 = shalt.err (!%p2758_p2)
}
   0x8   :  { %s2762_s30 = scalar_lea.vmem %s25_s22, 256  ;;  %p2767_p4 = scmp.lt.s32.totalorder %s25_s22, %s25_s22 }
   0x9   :  { %p2763_p3 = scmp.ne.s32.totalorder %s25_s22, %s2762_s30  ;;  %p2768_p5 = scmp.lt.s32.totalorder %s2762_s30, %s2762_s30 }
   0xb   :  { %p2769_p6 = por %p2768_p5, %p2767_p4 }
   0xd   :  { %p2770_p7 = pnand %p2769_p6, %p2763_p3 }
   0xf   :  { %2773 = shalt.err (!%p2770_p7)
}
  0x10   :  { %s2801_s13 = smov 128   ;;  %s2802_s14 = smov 8  }
  0x11   :  { %30 = dma.hbm_to_vmem [thread:$0]  %s3237_s0, 256, %s25_s22, [#allocation3], %s2801_s13, %s2801_s13, %s2802_s14  }
  0x12   :  { %2796 = dma.done.wait [#allocation3], 256  }
  0x13   :  { %2797 = vsyncadd [#allocation3], 4294967040  ;;  %vm69_vm0 = vcmask 261120   ;;  %v58_v0 = vld [vmem:[%s3239_s2] sm:$0xff]  ;;  %v59_v1 = vld [vmem:[%s3239_s2 + $0x8] sm:$0xff]  ;;  %v2803_v8 = vmov 0.0  }
  0x14   :  { %v60_v2 = vld [vmem:[%s3239_s2 + $0x10] sm:$0xff]  ;;  %v2663_v3 = vpack.c.bf16 %v59_v1, %v58_v0  ;;  %v61_v4 = vld [vmem:[%s3239_s2 + $0x18] sm:$0xff]  ;;  %v2909_v5 = vld [vmem:[#allocation2] sm:$0xff]  ;;  %2518 = vmatprep.subr.mxu1 %v2803_v8  ;;  %vm2804_vm1 = vmmov 0   ;;  %s2805_s22 = smov 120   ;;  %s2806_s26 = smov 96  }
  0x15   :  { %v2667_v6 = vpack.c.bf16 %v61_v4, %v60_v2  ;;  %2510 = vmatprep.mubr.msk.f32.mxu0 %vm69_vm0, %v2909_v5  ;;  %v2913_v7 = vld [vmem:[#allocation2 + $0x8] sm:$0xff]  ;;  %2520 = vmatprep.mubr.msk.f32.mxu1 %vm2804_vm1, %v2803_v8  ;;  %v2386_v9 = vld [vmem:[%s3240_s3] ss:$0 sm:$0xff]  ;;  %s2807_s27 = smov 88   ;;  %vm155_vm2 = vcmask 64512   ;;  %s2808_s29 = smov 56  }
  0x16   :  { %2664 = vmatprep.subr.bf16.mxu0 %v2663_v3  ;;  %v2950_v18 = vld [vmem:[%s3238_s1] ss:$0 sm:$0xff]  ;;  %s2809_s30 = smov 64   ;;  %s2810_s15 = smov 80   ;;  %v2969_v38 = vld [vmem:[%s3241_s4 + $0x8] sm:$0xff]  ;;  %vm2253_vm3 = vcmask 523264  }
  0x17   :  { %2666 = vmatpush3.bf16.msra.mxu0 %v2663_v3  ;;  %s2811_s16 = smov 112   ;;  %v2984_v47 = vld [vmem:[%s3241_s4] sm:$0xff]  ;;  %s2812_s21 = smov 72  }
  0x18   :  { %2668 = vmatprep.subr.bf16.mxu0 %v2667_v6  ;;  %s2813_s23 = smov 104   ;;  %s2814_s24 = smov 48  }
  0x19   :  { %s2815_s2 = smov 40  }
  0x1b   :  { %2670 = vmatpush3.bf16.msra.mxu0 %v2667_v6 }
  0x1c   :  { %2513 = vmatprep.subr.mxu0 %v2803_v8 }
  0x1e   :  { %2511 = vmatmul.mubr.msk.f32.vlgmr.msra.gmra.mrb[0].mxu0 %vm69_vm0, %v2913_v7 }
  0x1f   :  { %2515 = vmatprep.mubr.msk.f32.mxu0 %vm2804_vm1, %v2803_v8 }
  0xf1   :  { %v2512_v10 = vpop.f32.mrb[0].mxu0 }
  0xf2   :  { %v2926_v11 = vadd.f32 %v2512_v10, %v2386_v9  ;;  %v142_v12 = vpop.f32.mrb[1].mxu0 }
  0xf3   :  { %v2928_v13 = vadd.f32 %v2386_v9, %v142_v12 }
  0xf5   :  { %324 = vrot.lane.b32.xlu1 %v2928_v13, %s2805_s22  ;;  %153 = vrot.lane.b32.xlu0 %v2928_v13, %s2806_s26 }
  0xf9   :  { %326 = vrot.lane.b32.xlu0 %v2928_v13, %s2807_s27 }
 0x167   :  { %v154_v14 = vpop.permute.xlu0 %153  ;;  %v325_v16 = vpop.permute.xlu1 %324 }
 0x168   :  { %2514 = vmatpush3.xpose.msk.msra.mxu0 %vm155_vm2, %v154_v14 }
 0x169   :  { %2523 = vmatprep.subr.mxu0 %v2803_v8 }
 0x16b   :  { %2516 = vmatmul.mubr.msk.f32.vlgmr.msra.gmra.mrb[2].mxu0 %vm155_vm2, %v2928_v13  ;;  %v327_v15 = vpop.permute.xlu0 %326 }
 0x16c   :  { %2524 = vmatpush3.xpose.msk.msra.mxu0 %vm155_vm2, %v327_v15  ;;  %2525 = vmatprep.mubr.msk.f32.mxu0 %vm2804_vm1, %v2803_v8 }
 0x16d   :  { %2533 = vmatprep.subr.mxu0 %v2803_v8 }
 0x16f   :  { %2526 = vmatmul.mubr.msk.f32.vlgmr.msra.gmra.mrb[4].mxu0 %vm155_vm2, %v325_v16  ;;  %v3024_v16 = vld [vmem:[%s3241_s4 + $0x10] sm:$0xff] }
 0x170   :  { %2535 = vmatprep.mubr.msk.f32.mxu0 %vm2804_vm1, %v2803_v8  ;;  %2534 = vmatpush3.msra.mxu0 %v2969_v38 }
 0x171   :  { %2543 = vmatprep.subr.mxu0 %v2803_v8 }
 0x23e   :  { %v226_v17 = vpop.f32.mrb[2].mxu0 }
 0x23f   :  { %v230_v19 = vmul.f32 0.35355338, %v226_v17  ;;  %v2517_v20 = vpop.f32.mrb[3].mxu0 }
 0x241   :  { %v235_v21 = vadd.f32 %v2950_v18, %v230_v19 }
 0x242   :  { %v398_v22 = vpop.f32.mrb[4].mxu0 }
 0x243   :  { %v402_v23 = vmul.f32 0.35355338, %v398_v22  ;;  %v2527_v24 = vpop.f32.mrb[5].mxu0  ;;  %v236_v25 = vsel %vm155_vm2, %v235_v21, -inf }
 0x244   :  { %237 = vmax.xlane.f32.xlu1 %v236_v25 }
 0x245   :  { %v403_v26 = vadd.f32 %v2950_v18, %v402_v23 }
 0x247   :  { %v404_v27 = vsel %vm155_vm2, %v403_v26, -inf }
 0x248   :  { %405 = vmax.xlane.f32.xlu0 %v404_v27 }
 0x2d1   :  { %v238_v28 = vpop.xlane.xlu1 %237 }
 0x2d2   :  { %v239_v29 = vsub.f32 %v235_v21, %v238_v28 }
 0x2d4   :  { %v240_v30 = vmul.f32 1.442695, %v239_v29 }
 0x2d5   :  { %v406_v31 = vpop.xlane.xlu0 %405 }
 0x2d6   :  { %2712 = vpow2.f32 %v240_v30  ;;  %v407_v32 = vsub.f32 %v403_v26, %v406_v31 }
 0x2d8   :  { %v408_v33 = vmul.f32 1.442695, %v407_v32 }
 0x2da   :  { %2714 = vpow2.f32 %v408_v33 }
 0x2e0   :  { %v2713_v34 = vpop.eup %2712 }
 0x2e1   :  { %v242_v35 = vsel %vm155_vm2, %v2713_v34, 0.0 }
 0x2e2   :  { %243 = vadd.xlane.f32.xlu0 %v242_v35 }
 0x2e4   :  { %v2715_v36 = vpop.eup %2714 }
 0x2e5   :  { %v410_v37 = vsel %vm155_vm2, %v2715_v36, 0.0 }
 0x2e6   :  { %411 = vadd.xlane.f32.xlu1 %v410_v37 }
 0x2f7   :  { %415 = vrot.lane.b32.xlu1 %v2928_v13, %s2808_s29 }
 0x2f8   :  { %247 = vrot.lane.b32.xlu0 %v2928_v13, %s2809_s30 }
 0x2fb   :  { %640 = vrot.lane.b32.xlu1 %v2928_v13, %s2810_s15 }
 0x2fc   :  { %638 = vrot.lane.b32.xlu0 %v2928_v13, %s2811_s16 }
 0x36f   :  { %v244_v39 = vpop.xlane.xlu0 %243 }
 0x370   :  { %2716 = vrcp.f32 %v244_v39  ;;  %v3063_v39 = vld [vmem:[%s3241_s4 + $0x18] sm:$0xff] }
 0x373   :  { %v412_v40 = vpop.xlane.xlu1 %411  ;;  %v248_v41 = vpop.permute.xlu0 %247 }
 0x374   :  { %2718 = vrcp.f32 %v412_v40  ;;  %2519 = vmatpush3.msra.mxu1 %v248_v41 }
 0x375   :  { %2528 = vmatprep.subr.mxu1 %v2803_v8 }
 0x377   :  { %v416_v44 = vpop.permute.xlu1 %415  ;;  %v639_v53 = vpop.permute.xlu0 %638 }
 0x37a   :  { %v2717_v42 = vpop.eup %2716 }
 0x37b   :  { %v246_v43 = vmul.f32 %v2717_v42, %v2713_v34  ;;  %v641_v51 = vpop.permute.xlu1 %640  ;;  %v3073_v42 = vld [vmem:[%s3238_s1 + $0x1] ss:$0 sm:$0xff] }
 0x37d   :  { %2521 = vmatmul.mubr.msk.f32.vlgmr.msra.gmra.mrb[0].mxu1 %vm155_vm2, %v246_v43 }
 0x37e   :  { %v2719_v45 = vpop.eup %2718  ;;  %2529 = vmatpush3.msra.mxu1 %v416_v44  ;;  %2530 = vmatprep.mubr.msk.f32.mxu1 %vm2804_vm1, %v2803_v8 }
 0x37f   :  { %v414_v46 = vmul.f32 %v2719_v45, %v2715_v36  ;;  %2538 = vmatprep.subr.mxu1 %v2803_v8 }
 0x381   :  { %2531 = vmatmul.mubr.msk.f32.vlgmr.msra.gmra.mrb[2].mxu1 %vm155_vm2, %v414_v46 }
 0x382   :  { %2540 = vmatprep.mubr.msk.f32.mxu1 %vm2804_vm1, %v2803_v8  ;;  %2539 = vmatpush3.msra.mxu1 %v2984_v47 }
 0x383   :  { %2548 = vmatprep.subr.mxu1 %v2803_v8 }
 0x450   :  { %v319_v48 = vpop.f32.mrb[0].mxu1 }
 0x451   :  { %v2522_v49 = vpop.f32.mrb[1].mxu1  ;;  %2541 = vmatmul.mubr.msk.f32.vlgmr.msra.gmra.mrb[4].mxu1 %vm155_vm2, %v319_v48 }
 0x452   :  { %2550 = vmatprep.mubr.msk.f32.mxu1 %vm2804_vm1, %v2803_v8 }
 0x454   :  { %v487_v50 = vpop.f32.mrb[2].mxu1 }
 0x455   :  { %v2532_v52 = vpop.f32.mrb[3].mxu1  ;;  %2536 = vmatmul.mubr.msk.f32.vlgmr.msra.gmra.mrb[6].mxu0 %vm155_vm2, %v487_v50 }
 0x456   :  { %2544 = vmatpush3.xpose.msk.msra.mxu0 %vm155_vm2, %v641_v51  ;;  %2545 = vmatprep.mubr.msk.f32.mxu0 %vm2804_vm1, %v2803_v8 }
 0x457   :  { %2553 = vmatprep.subr.mxu0 %v2803_v8 }
 0x459   :  { %2546 = vmatmul.mubr.msk.f32.vlgmr.msra.gmra.mrb[8].mxu0 %vm155_vm2, %v639_v53 }
 0x45a   :  { %2555 = vmatprep.mubr.msk.f32.mxu0 %vm2804_vm1, %v2803_v8  ;;  %2554 = vmatpush3.msra.mxu0 %v3024_v16 }
 0x45b   :  { %2563 = vmatprep.subr.mxu0 %v2803_v8 }
 0x524   :  { %v634_v54 = vpop.f32.mrb[4].mxu1 }
 0x525   :  { %v2542_v55 = vpop.f32.mrb[5].mxu1 }
 0x528   :  { %v561_v56 = vpop.f32.mrb[6].mxu0 }
 0x529   :  { %v2999_v57 = vadd.f32 %v634_v54, %v561_v56  ;;  %v2537_v58 = vpop.f32.mrb[7].mxu0 }
 0x52c   :  { %v712_v59 = vpop.f32.mrb[8].mxu0 }
 0x52d   :  { %v716_v60 = vmul.f32 0.35355338, %v712_v59  ;;  %v2547_v61 = vpop.f32.mrb[9].mxu0 }
 0x52f   :  { %v717_v62 = vadd.f32 %v2950_v18, %v716_v60 }
 0x531   :  { %v718_v63 = vsel %vm155_vm2, %v717_v62, -inf }
 0x532   :  { %719 = vmax.xlane.f32.xlu1 %v718_v63 }
 0x543   :  { %882 = vrot.lane.b32.xlu1 %v2928_v13, %s2812_s21 }
 0x547   :  { %880 = vrot.lane.b32.xlu1 %v2928_v13, %s2813_s23 }
 0x54b   :  { %1132 = vrot.lane.b32.xlu1 %v2926_v11, %s2806_s26 }
 0x5bf   :  { %v720_v0 = vpop.xlane.xlu1 %719 }
 0x5c0   :  { %v721_v1 = vsub.f32 %v717_v62, %v720_v0 }
 0x5c2   :  { %v722_v2 = vmul.f32 1.442695, %v721_v1 }
 0x5c3   :  { %v883_v12 = vpop.permute.xlu1 %882 }
 0x5c4   :  { %2720 = vpow2.f32 %v722_v2 }
 0x5c7   :  { %v881_v15 = vpop.permute.xlu1 %880 }
 0x5cb   :  { %v1133_v32 = vpop.permute.xlu1 %1132 }
 0x5ce   :  { %v2721_v3 = vpop.eup %2720 }
 0x5cf   :  { %v724_v4 = vsel %vm155_vm2, %v2721_v3, 0.0 }
 0x5d0   :  { %725 = vadd.xlane.f32.xlu0 %v724_v4 }
 0x5e6   :  { %729 = vrot.lane.b32.xlu0 %v2928_v13, %s2814_s24 }
 0x65d   :  { %v726_v6 = vpop.xlane.xlu0 %725 }
 0x65e   :  { %2722 = vrcp.f32 %v726_v6 }
 0x661   :  { %v730_v9 = vpop.permute.xlu0 %729 }
 0x662   :  { %2549 = vmatpush3.msra.mxu1 %v730_v9 }
 0x663   :  { %2558 = vmatprep.subr.mxu1 %v2803_v8 }
 0x668   :  { %v2723_v10 = vpop.eup %2722 }
 0x669   :  { %v728_v14 = vmul.f32 %v2723_v10, %v2721_v3 }
 0x66b   :  { %2551 = vmatmul.mubr.msk.f32.vlgmr.msra.gmra.mrb[6].mxu1 %vm155_vm2, %v728_v14 }
 0x66c   :  { %2559 = vmatpush3.xpose.msk.msra.mxu1 %vm155_vm2, %v883_v12  ;;  %2560 = vmatprep.mubr.msk.f32.mxu1 %vm2804_vm1, %v2803_v8 }
 0x66d   :  { %2568 = vmatprep.subr.mxu1 %v2803_v8 }
 0x66f   :  { %2561 = vmatmul.mubr.msk.f32.vlgmr.msra.gmra.mrb[8].mxu1 %vm155_vm2, %v881_v15 }
 0x670   :  { %2570 = vmatprep.mubr.msk.f32.mxu1 %vm2804_vm1, %v2803_v8  ;;  %2569 = vmatpush3.msra.mxu1 %v3063_v39 }
 0x671   :  { %2578 = vmatprep.subr.mxu1 %v2803_v8 }
 0x73e   :  { %v801_v17 = vpop.f32.mrb[6].mxu1 }
 0x73f   :  { %v2552_v19 = vpop.f32.mrb[7].mxu1  ;;  %2556 = vmatmul.mubr.msk.f32.vlgmr.msra.gmra.mrb[10].mxu0 %vm155_vm2, %v801_v17 }
 0x740   :  { %2565 = vmatprep.mubr.msk.f32.mxu0 %vm2804_vm1, %v2803_v8 }
 0x742   :  { %v954_v20 = vpop.f32.mrb[8].mxu1 }
 0x743   :  { %v958_v21 = vmul.f32 0.35355338, %v954_v20  ;;  %v2562_v22 = vpop.f32.mrb[9].mxu1 }
 0x745   :  { %v959_v23 = vadd.f32 %v2950_v18, %v958_v21 }
 0x747   :  { %v960_v24 = vsel %vm155_vm2, %v959_v23, -inf }
 0x748   :  { %961 = vmax.xlane.f32.xlu0 %v960_v24 }
 0x75e   :  { %971 = vrot.lane.b32.xlu0 %v2928_v13, %s2815_s2 }
 0x762   :  { %1303 = vrot.lane.b32.xlu0 %v2926_v11, %s2807_s27 }
 0x7d5   :  { %v962_v25 = vpop.xlane.xlu0 %961 }
 0x7d6   :  { %v963_v26 = vsub.f32 %v959_v23, %v962_v25 }
 0x7d8   :  { %v964_v27 = vmul.f32 1.442695, %v963_v26 }
 0x7d9   :  { %v972_v28 = vpop.permute.xlu0 %971 }
 0x7da   :  { %2724 = vpow2.f32 %v964_v27  ;;  %2564 = vmatpush3.msra.mxu0 %v972_v28 }
 0x7db   :  { %2573 = vmatprep.subr.mxu0 %v2803_v8 }
 0x7dd   :  { %v1304_v36 = vpop.permute.xlu0 %1303 }
 0x7e4   :  { %v2725_v29 = vpop.eup %2724 }
 0x7e5   :  { %v966_v18 = vsel %vm155_vm2, %v2725_v29, 0.0 }
 0x7e6   :  { %967 = vadd.xlane.f32.xlu1 %v966_v18 }
 0x7f7   :  { %1301 = vrot.lane.b32.xlu1 %v2926_v11, %s2805_s22 }
 0x812   :  { %v875_v30 = vpop.f32.mrb[10].mxu0 }
 0x813   :  { %v3042_v13 = vadd.f32 %v875_v30, %v2999_v57  ;;  %v2557_v31 = vpop.f32.mrb[11].mxu0 }
 0x873   :  { %v968_v33 = vpop.xlane.xlu1 %967 }
 0x874   :  { %2726 = vrcp.f32 %v968_v33 }
 0x877   :  { %v1302_v37 = vpop.permute.xlu1 %1301 }
 0x87e   :  { %v2727_v34 = vpop.eup %2726 }
 0x87f   :  { %v970_v35 = vmul.f32 %v2727_v34, %v2725_v29 }
 0x881   :  { %2566 = vmatmul.mubr.msk.f32.vlgmr.msra.gmra.mrb[12].mxu0 %vm155_vm2, %v970_v35 }
 0x882   :  { %2574 = vmatpush3.xpose.msk.msra.mxu0 %vm155_vm2, %v1133_v32  ;;  %2575 = vmatprep.mubr.msk.f32.mxu0 %vm2804_vm1, %v2803_v8 }
 0x883   :  { %2583 = vmatprep.subr.mxu0 %v2803_v8 }
 0x885   :  { %2576 = vmatmul.mubr.msk.f32.vlgmr.msra.gmra.mrb[14].mxu0 %vm155_vm2, %v2926_v11 }
 0x886   :  { %2584 = vmatpush3.xpose.msk.msra.mxu0 %vm155_vm2, %v1304_v36  ;;  %2585 = vmatprep.mubr.msk.f32.mxu0 %vm2804_vm1, %v2803_v8 }
 0x887   :  { %2593 = vmatprep.subr.mxu0 %v2803_v8 }
 0x889   :  { %2586 = vmatmul.mubr.msk.f32.vlgmr.msra.gmra.mrb[16].mxu0 %vm155_vm2, %v1302_v37 }
 0x88a   :  { %2594 = vmatpush3.msra.mxu0 %v2969_v38  ;;  %2595 = vmatprep.mubr.msk.f32.mxu0 %vm2804_vm1, %v2803_v8 }
 0x88b   :  { %2603 = vmatprep.subr.mxu0 %v2803_v8 }
 0x954   :  { %v1043_v40 = vpop.f32.mrb[12].mxu0 }
 0x955   :  { %v2567_v41 = vpop.f32.mrb[13].mxu0  ;;  %2571 = vmatmul.mubr.msk.f32.vlgmr.msra.gmra.mrb[10].mxu1 %vm155_vm2, %v1043_v40 }
 0x956   :  { %2580 = vmatprep.mubr.msk.f32.mxu1 %vm2804_vm1, %v2803_v8 }
 0x958   :  { %v1204_v38 = vpop.f32.mrb[14].mxu0 }
 0x959   :  { %v1208_v43 = vmul.f32 0.35355338, %v1204_v38  ;;  %v2577_v44 = vpop.f32.mrb[15].mxu0 }
 0x95a   :  { %v2406_v44 = vld [vmem:[%s3242_s5] ss:$0 sm:$0xff] }
 0x95b   :  { %v1213_v45 = vadd.f32 %v3073_v42, %v1208_v43 }
 0x95c   :  { %v1375_v46 = vpop.f32.mrb[16].mxu0 }
 0x95d   :  { %v1379_v48 = vmul.f32 0.35355338, %v1375_v46  ;;  %v2587_v49 = vpop.f32.mrb[17].mxu0  ;;  %v1214_v50 = vsel %vm155_vm2, %v1213_v45, -inf }
 0x95e   :  { %1215 = vmax.xlane.f32.xlu0 %v1214_v50 }
 0x95f   :  { %v1380_v51 = vadd.f32 %v3073_v42, %v1379_v48 }
 0x961   :  { %v1381_v52 = vsel %vm155_vm2, %v1380_v51, -inf }
 0x962   :  { %1382 = vmax.xlane.f32.xlu1 %v1381_v52 }
 0x973   :  { %1225 = vrot.lane.b32.xlu1 %v2926_v11, %s2809_s30 }
 0x977   :  { %1616 = vrot.lane.b32.xlu1 %v2926_v11, %s2810_s15 }
 0x97b   :  { %1614 = vrot.lane.b32.xlu1 %v2926_v11, %s2811_s16 }
 0x9eb   :  { %v1216_v53 = vpop.xlane.xlu0 %1215 }
 0x9ec   :  { %v1217_v54 = vsub.f32 %v1213_v45, %v1216_v53 }
 0x9ee   :  { %v1218_v55 = vmul.f32 1.442695, %v1217_v54 }
 0x9ef   :  { %v1383_v56 = vpop.xlane.xlu1 %1382 }
 0x9f0   :  { %2728 = vpow2.f32 %v1218_v55  ;;  %v1384_v57 = vsub.f32 %v1380_v51, %v1383_v56 }
 0x9f2   :  { %v1385_v58 = vmul.f32 1.442695, %v1384_v57 }
 0x9f3   :  { %v1226_v59 = vpop.permute.xlu1 %1225 }
 0x9f4   :  { %2730 = vpow2.f32 %v1385_v58  ;;  %2579 = vmatpush3.msra.mxu1 %v1226_v59 }
 0x9f5   :  { %2588 = vmatprep.subr.mxu1 %v2803_v8 }
 0x9f7   :  { %v1617_v19 = vpop.permute.xlu1 %1616 }
 0x9fa   :  { %v2729_v60 = vpop.eup %2728 }
 0x9fb   :  { %v1220_v61 = vsel %vm155_vm2, %v2729_v60, 0.0 }
 0x9fc   :  { %1221 = vadd.xlane.f32.xlu0 %v1220_v61 }
 0x9fe   :  { %v2731_v62 = vpop.eup %2730 }
 0x9ff   :  { %v1387_v63 = vsel %vm155_vm2, %v2731_v62, 0.0 }
 0xa00   :  { %1388 = vadd.xlane.f32.xlu0 %v1387_v63 }
 0xa16   :  { %1392 = vrot.lane.b32.xlu0 %v2926_v11, %s2808_s29 }
 0xa28   :  { %v1117_v0 = vpop.f32.mrb[10].mxu1 }
 0xa29   :  { %v3091_v1 = vadd.f32 %v1117_v0, %v3042_v13  ;;  %v2572_v2 = vpop.f32.mrb[11].mxu1 }
 0xa2b   :  { %v1129_v46 = vadd.f32 %v2406_v44, %v3091_v1 }
 0xa2d   :  { %v2097_v51 = vadd.f32 %v1129_v46, %v2909_v5 }
 0xa2f   :  { %v2099_v52 = vsel %vm69_vm0, %v2097_v51, 0.0 }
 0xa89   :  { %v1222_v3 = vpop.xlane.xlu0 %1221 }
 0xa8a   :  { %2732 = vrcp.f32 %v1222_v3 }
 0xa8d   :  { %v1389_v4 = vpop.xlane.xlu0 %1388 }
 0xa8e   :  { %2734 = vrcp.f32 %v1389_v4 }
 0xa91   :  { %v1393_v10 = vpop.permute.xlu0 %1392 }
 0xa94   :  { %v2733_v6 = vpop.eup %2732 }
 0xa95   :  { %v1224_v9 = vmul.f32 %v2733_v6, %v2729_v60 }
 0xa97   :  { %2581 = vmatmul.mubr.msk.f32.vlgmr.msra.gmra.mrb[12].mxu1 %vm155_vm2, %v1224_v9 }
 0xa98   :  { %v2735_v12 = vpop.eup %2734  ;;  %2589 = vmatpush3.msra.mxu1 %v1393_v10  ;;  %2590 = vmatprep.mubr.msk.f32.mxu1 %vm2804_vm1, %v2803_v8 }
 0xa99   :  { %v1391_v14 = vmul.f32 %v2735_v12, %v2731_v62  ;;  %2598 = vmatprep.subr.mxu1 %v2803_v8 }
 0xa9b   :  { %2591 = vmatmul.mubr.msk.f32.vlgmr.msra.gmra.mrb[14].mxu1 %vm155_vm2, %v1391_v14 }
 0xa9c   :  { %2599 = vmatpush3.msra.mxu1 %v2984_v47  ;;  %2600 = vmatprep.mubr.msk.f32.mxu1 %vm2804_vm1, %v2803_v8  ;;  %v1615_v47 = vpop.permute.xlu1 %1614 }
 0xa9d   :  { %2608 = vmatprep.subr.mxu1 %v2803_v8 }
 0xb6a   :  { %v1297_v15 = vpop.f32.mrb[12].mxu1 }
 0xb6b   :  { %v2582_v17 = vpop.f32.mrb[13].mxu1  ;;  %2601 = vmatmul.mubr.msk.f32.vlgmr.msra.gmra.mrb[16].mxu1 %vm155_vm2, %v1297_v15 }
 0xb6c   :  { %2610 = vmatprep.mubr.msk.f32.mxu1 %vm2804_vm1, %v2803_v8 }
 0xb6e   :  { %v1464_v20 = vpop.f32.mrb[14].mxu1 }
 0xb6f   :  { %v2592_v21 = vpop.f32.mrb[15].mxu1  ;;  %2596 = vmatmul.mubr.msk.f32.vlgmr.msra.gmra.mrb[18].mxu0 %vm155_vm2, %v1464_v20 }
 0xb70   :  { %2604 = vmatpush3.xpose.msk.msra.mxu0 %vm155_vm2, %v1617_v19  ;;  %2605 = vmatprep.mubr.msk.f32.mxu0 %vm2804_vm1, %v2803_v8 }
 0xb71   :  { %2613 = vmatprep.subr.mxu0 %v2803_v8 }
 0xb73   :  { %2606 = vmatmul.mubr.msk.f32.vlgmr.msra.gmra.mrb[20].mxu0 %vm155_vm2, %v1615_v47 }
 0xb74   :  { %2614 = vmatpush3.msra.mxu0 %v3024_v16  ;;  %2615 = vmatprep.mubr.msk.f32.mxu0 %vm2804_vm1, %v2803_v8 }
 0xb75   :  { %2623 = vmatprep.subr.mxu0 %v2803_v8 }
 0xc3e   :  { %v1610_v22 = vpop.f32.mrb[16].mxu1 }
 0xc3f   :  { %v2602_v23 = vpop.f32.mrb[17].mxu1 }
 0xc42   :  { %v1537_v24 = vpop.f32.mrb[18].mxu0 }
 0xc43   :  { %v1611_v25 = vadd.f32 %v1610_v22, %v1537_v24  ;;  %v2597_v26 = vpop.f32.mrb[19].mxu0 }
 0xc44   :  { %v3162_v26 = vld [vmem:[%s3248_s11] ss:$0 sm:$0xff] }
 0xc46   :  { %v1688_v27 = vpop.f32.mrb[20].mxu0 }
 0xc47   :  { %v1692_v28 = vmul.f32 0.35355338, %v1688_v27  ;;  %v2607_v29 = vpop.f32.mrb[21].mxu0 }
 0xc48   :  { %v2144_v29 = vld [vmem:[%s3243_s6] sm:$0xff] }
 0xc49   :  { %v1693_v18 = vadd.f32 %v3073_v42, %v1692_v28 }
 0xc4b   :  { %v1694_v30 = vsel %vm155_vm2, %v1693_v18, -inf }
 0xc4c   :  { %1695 = vmax.xlane.f32.xlu0 %v1694_v30 }
 0xc62   :  { %1705 = vrot.lane.b32.xlu0 %v2926_v11, %s2814_s24 }
 0xc66   :  { %1855 = vrot.lane.b32.xlu0 %v2926_v11, %s2813_s23 }
 0xcd9   :  { %v1696_v16 = vpop.xlane.xlu0 %1695 }
 0xcda   :  { %v1697_v13 = vsub.f32 %v1693_v18, %v1696_v16  ;;  %v2145_v18 = vld [vmem:[%s3243_s6 + $0x8] sm:$0xff]  ;;  %v2146_v16 = vld [vmem:[%s3243_s6 + $0x10] sm:$0xff] }
 0xcdb   :  { %v2671_v30 = vpack.c.bf16 %v2145_v18, %v2144_v29 }
 0xcdc   :  { %v1698_v31 = vmul.f32 1.442695, %v1697_v13  ;;  %v2147_v13 = vld [vmem:[%s3243_s6 + $0x18] sm:$0xff] }
 0xcdd   :  { %v1706_v32 = vpop.permute.xlu0 %1705 }
 0xcde   :  { %2736 = vpow2.f32 %v1698_v31  ;;  %2609 = vmatpush3.msra.mxu1 %v1706_v32  ;;  %v2675_v31 = vpack.c.bf16 %v2147_v13, %v2146_v16  ;;  %v2238_v32 = vld [vmem:[%s3245_s8] sm:$0xff] }
 0xcdf   :  { %2618 = vmatprep.subr.mxu1 %v2803_v8 }
 0xce1   :  { %v1856_v41 = vpop.permute.xlu0 %1855 }
 0xce8   :  { %v2737_v33 = vpop.eup %2736 }
 0xce9   :  { %v1700_v34 = vsel %vm155_vm2, %v2737_v33, 0.0 }
 0xcea   :  { %1701 = vadd.xlane.f32.xlu1 %v1700_v34  ;;  %v2240_v34 = vld [vmem:[%s3245_s8 + $0x10] sm:$0xff] }
 0xcfb   :  { %1857 = vrot.lane.b32.xlu1 %v2926_v11, %s2812_s21 }
 0xd77   :  { %v1702_v35 = vpop.xlane.xlu1 %1701 }
 0xd78   :  { %2738 = vrcp.f32 %v1702_v35 }
 0xd7b   :  { %v1858_v40 = vpop.permute.xlu1 %1857 }
 0xd82   :  { %v2739_v36 = vpop.eup %2738 }
 0xd83   :  { %v1704_v37 = vmul.f32 %v2739_v36, %v2737_v33  ;;  %v2239_v33 = vld [vmem:[%s3245_s8 + $0x8] sm:$0xff]  ;;  %v2241_v36 = vld [vmem:[%s3245_s8 + $0x18] sm:$0xff] }
 0xd84   :  { %v2679_v35 = vpack.c.bf16 %v2239_v33, %v2238_v32 }
 0xd85   :  { %2611 = vmatmul.mubr.msk.f32.vlgmr.msra.gmra.mrb[18].mxu1 %vm155_vm2, %v1704_v37  ;;  %v2683_v37 = vpack.c.bf16 %v2241_v36, %v2240_v34 }
 0xd86   :  { %2619 = vmatpush3.xpose.msk.msra.mxu1 %vm155_vm2, %v1858_v40  ;;  %2620 = vmatprep.mubr.msk.f32.mxu1 %vm2804_vm1, %v2803_v8  ;;  %v2242_v40 = vld [vmem:[%s3245_s8 + $0x20] sm:$0xff] }
 0xd87   :  { %2628 = vmatprep.subr.mxu1 %v2803_v8 }
 0xd89   :  { %2621 = vmatmul.mubr.msk.f32.vlgmr.msra.gmra.mrb[20].mxu1 %vm155_vm2, %v1856_v41  ;;  %v2243_v41 = vld [vmem:[%s3245_s8 + $0x28] sm:$0xff] }
 0xd8a   :  { %2629 = vmatpush3.msra.mxu1 %v3063_v39  ;;  %2630 = vmatprep.mubr.msk.f32.mxu1 %vm2804_vm1, %v2803_v8 }
 0xd8b   :  { %2680 = vmatprep.subr.bf16.mxu1 %v2679_v35 }
 0xe58   :  { %v1777_v38 = vpop.f32.mrb[18].mxu1 }
 0xe59   :  { %v2612_v43 = vpop.f32.mrb[19].mxu1  ;;  %2616 = vmatmul.mubr.msk.f32.vlgmr.msra.gmra.mrb[22].mxu0 %vm155_vm2, %v1777_v38  ;;  %v2687_v38 = vpack.c.bf16 %v2243_v41, %v2242_v40 }
 0xe5a   :  { %2625 = vmatprep.mubr.msk.f32.mxu0 %vm2804_vm1, %v2803_v8 }
 0xe5c   :  { %v1929_v45 = vpop.f32.mrb[20].mxu1 }
 0xe5d   :  { %v1933_v48 = vmul.f32 0.35355338, %v1929_v45  ;;  %v2622_v49 = vpop.f32.mrb[21].mxu1 }
 0xe5f   :  { %v1934_v39 = vadd.f32 %v3073_v42, %v1933_v48 }
 0xe61   :  { %v1935_v50 = vsel %vm155_vm2, %v1934_v39, -inf }
 0xe62   :  { %1936 = vmax.xlane.f32.xlu1 %v1935_v50  ;;  %v2244_v50 = vld [vmem:[%s3245_s8 + $0x30] sm:$0xff] }
 0xe66   :  { %2100 = vadd.xlane.f32.xlu1 %v2099_v52 }
 0xeef   :  { %v1937_v53 = vpop.xlane.xlu1 %1936 }
 0xef0   :  { %v1938_v54 = vsub.f32 %v1934_v39, %v1937_v53  ;;  %v2426_v53 = vld [vmem:[%s3244_s7] ss:$0 sm:$0xff]  ;;  %s2816_s7 = smov [#allocation5]  }
 0xef2   :  { %v1939_v55 = vmul.f32 1.442695, %v1938_v54 }
 0xef3   :  { %v2101_v0 = vpop.xlane.xlu1 %2100 }
 0xef4   :  { %2740 = vpow2.f32 %v1939_v55  ;;  %v2106_v1 = vmul.f32 0.03125, %v2101_v0 }
 0xef6   :  { %v2108_v4 = vsub.f32 %v2097_v51, %v2106_v1  ;;  %v2245_v51 = vld [vmem:[%s3245_s8 + $0x38] sm:$0xff]  ;;  %s2374_s8 = sshll.u32 %s2816_s7, 4  ;;  %s2375_s8 = int_to_ptr.vmem [resolvable:$true] %s2374_s8 }
 0xef7   :  { %v2691_v52 = vpack.c.bf16 %v2245_v51, %v2244_v50  ;;  %p2779_p9 = scmp.lt.s32.totalorder %s2375_s8, %s2375_s8 }
 0xef8   :  { %v2110_v12 = vmul.f32 %v2108_v4, %v2108_v4 }
 0xefa   :  { %v2112_v14 = vsel %vm69_vm0, %v2110_v12, 0.0 }
 0xefe   :  { %v2741_v8 = vpop.eup %2740 }
 0xeff   :  { %v1941_v56 = vsel %vm155_vm2, %v2741_v8, 0.0 }
 0xf00   :  { %1942 = vadd.xlane.f32.xlu0 %v1941_v56 }
 0xf16   :  { %1946 = vrot.lane.b32.xlu0 %v2926_v11, %s2815_s2 }
 0xf2c   :  { %v1850_v42 = vpop.f32.mrb[22].mxu0 }
 0xf2d   :  { %v1854_v57 = vadd.f32 %v1850_v42, %v1611_v25  ;;  %v2617_v58 = vpop.f32.mrb[23].mxu0 }
 0xf2e   :  { %v2429_v58 = vld [vmem:[%s3246_s9] ss:$0 sm:$0xff]  ;;  %s2774_s9 = scalar_lea.vmem %s2375_s8, 256 }
 0xf2f   :  { %p2775_p8 = scmp.ne.s32.totalorder %s2375_s8, %s2774_s9  ;;  %p2780_p10 = scmp.lt.s32.totalorder %s2774_s9, %s2774_s9 }
 0xf31   :  { %p2781_p11 = por %p2780_p10, %p2779_p9 }
 0xf33   :  { %p2782_p12 = pnand %p2781_p11, %p2775_p8 }
 0xf8d   :  { %v1943_v59 = vpop.xlane.xlu0 %1942 }
 0xf8e   :  { %2742 = vrcp.f32 %v1943_v59 }
 0xf91   :  { %v1947_v5 = vpop.permute.xlu0 %1946 }
 0xf92   :  { %2624 = vmatpush3.msra.mxu0 %v1947_v5 }
 0xf93   :  { %2672 = vmatprep.subr.bf16.mxu0 %v2671_v30 }
 0xf98   :  { %v2743_v60 = vpop.eup %2742 }
 0xf99   :  { %v1945_v61 = vmul.f32 %v2743_v60, %v2741_v8 }
 0xf9b   :  { %2626 = vmatmul.mubr.msk.f32.vlgmr.msra.gmra.mrb[24].mxu0 %vm155_vm2, %v1945_v61 }
 0xf9c   :  { %2674 = vmatpush3.bf16.msra.mxu0 %v2671_v30 }
 0xf9d   :  { %2676 = vmatprep.subr.bf16.mxu0 %v2675_v31 }
 0xfa0   :  { %2678 = vmatpush3.bf16.msra.mxu0 %v2675_v31 }
0x106e   :  { %v2018_v62 = vpop.f32.mrb[24].mxu0 }
0x106f   :  { %v2627_v63 = vpop.f32.mrb[25].mxu0  ;;  %2631 = vmatmul.mubr.msk.f32.vlgmr.msra.gmra.mrb[22].mxu1 %vm155_vm2, %v2018_v62 }
0x1070   :  { %2682 = vmatpush3.bf16.msra.mxu1 %v2679_v35 }
0x1071   :  { %2684 = vmatprep.subr.bf16.mxu1 %v2683_v37 }
0x1074   :  { %2686 = vmatpush3.bf16.msra.mxu1 %v2683_v37 }
0x1075   :  { %2688 = vmatprep.subr.bf16.mxu1 %v2687_v38 }
0x1078   :  { %2690 = vmatpush3.bf16.msra.mxu1 %v2687_v38 }
0x1079   :  { %2692 = vmatprep.subr.bf16.mxu1 %v2691_v52 }
0x107c   :  { %2694 = vmatpush3.bf16.msra.mxu1 %v2691_v52 }
0x1142   :  { %v2091_v2 = vpop.f32.mrb[22].mxu1 }
0x1143   :  { %v2095_v3 = vadd.f32 %v2091_v2, %v1854_v57  ;;  %v2632_v11 = vpop.f32.mrb[23].mxu1 }
0x1145   :  { %v2096_v6 = vadd.f32 %v2406_v44, %v2095_v3 }
0x1147   :  { %v2098_v9 = vadd.f32 %v2096_v6, %v2913_v7  ;;  %v3157_v7 = vld [vmem:[%s3247_s10] ss:$0 sm:$0xff] }
0x1149   :  { %v2102_v10 = vsel %vm69_vm0, %v2098_v9, 0.0 }
0x114a   :  { %2103 = vadd.xlane.f32.xlu1 %v2102_v10 }
0x114e   :  { %2113 = vadd.xlane.f32.xlu1 %v2112_v14 }
0x11d7   :  { %v2104_v15 = vpop.xlane.xlu1 %2103 }
0x11d8   :  { %v2107_v17 = vmul.f32 0.03125, %v2104_v15 }
0x11da   :  { %v2109_v19 = vsub.f32 %v2098_v9, %v2107_v17 }
0x11db   :  { %v2114_v20 = vpop.xlane.xlu1 %2113 }
0x11dc   :  { %v2118_v21 = vmul.f32 0.03125, %v2114_v20  ;;  %v2111_v47 = vmul.f32 %v2109_v19, %v2109_v19 }
0x11de   :  { %v2120_v22 = vadd.f32 1e-05, %v2118_v21  ;;  %v2115_v23 = vsel %vm69_vm0, %v2111_v47, 0.0 }
0x11df   :  { %2116 = vadd.xlane.f32.xlu1 %v2115_v23 }
0x11e0   :  { %2744 = vrsqrt.f32 %v2120_v22 }
0x11ea   :  { %v2745_v24 = vpop.eup %2744 }
0x11eb   :  { %v2124_v25 = vmul.f32 %v2745_v24, %v2108_v4 }
0x11ed   :  { %v2133_v27 = vmul.f32 %v3157_v7, %v2124_v25 }
0x11ef   :  { %v2142_v28 = vadd.f32 %v3162_v26, %v2133_v27 }
0x11f1   :  { %2641 = vmatprep.mubr.msk.f32.mxu0 %vm69_vm0, %v2142_v28 }
0x126c   :  { %v2117_v43 = vpop.xlane.xlu1 %2116 }
0x126d   :  { %v2119_v44 = vmul.f32 0.03125, %v2117_v43 }
0x126f   :  { %v2121_v45 = vadd.f32 1e-05, %v2119_v44 }
0x1271   :  { %2746 = vrsqrt.f32 %v2121_v45 }
0x127b   :  { %v2747_v46 = vpop.eup %2746 }
0x127c   :  { %v2125_v48 = vmul.f32 %v2747_v46, %v2109_v19 }
0x127e   :  { %v2134_v49 = vmul.f32 %v3157_v7, %v2125_v48 }
0x1280   :  { %v2143_v39 = vadd.f32 %v3162_v26, %v2134_v49 }
0x1282   :  { %2642 = vmatmul.mubr.msk.f32.vlgmr.msra.gmra.mrb[26].mxu0 %vm69_vm0, %v2143_v39 }
0x1355   :  { %v2643_v54 = vpop.f32.mrb[26].mxu0 }
0x1356   :  { %v2233_v55 = vadd.f32 %v2643_v54, %v2426_v53  ;;  %v2227_v8 = vpop.f32.mrb[27].mxu0 }
0x1357   :  { %v2228_v56 = vadd.f32 %v2426_v53, %v2227_v8 }
0x1358   :  { %v2237_v57 = vmax.f32 %v2233_v55, 0.0 }
0x1359   :  { %v2236_v42 = vmax.f32 %v2228_v56, 0.0 }
0x135b   :  { %2660 = vmatprep.mubr.msk.f32.mxu1 %vm2253_vm3, %v2236_v42 }
0x135c   :  { %2661 = vmatmul.mubr.msk.f32.vlgmr.msra.gmra.mrb[24].mxu1 %vm2253_vm3, %v2237_v57 }
0x142f   :  { %v2662_v59 = vpop.f32.mrb[24].mxu1 }
0x1430   :  { %v2326_v5 = vpop.f32.mrb[25].mxu1  ;;  %v2332_v60 = vadd.f32 %v2662_v59, %v2429_v58 }
0x1431   :  { %v2327_v61 = vadd.f32 %v2429_v58, %v2326_v5 }
0x1432   :  { %v2336_v0 = vadd.f32 %v2332_v60, %v2143_v39 }
0x1433   :  { %v2335_v62 = vadd.f32 %v2327_v61, %v2142_v28 }
0x1434   :  { %v2340_v1 = vsel %vm69_vm0, %v2336_v0, 0.0 }
0x1435   :  { %v2337_v63 = vsel %vm69_vm0, %v2335_v62, 0.0 }
0x1436   :  { %2338 = vadd.xlane.f32.xlu1 %v2337_v63 }
0x143a   :  { %2341 = vadd.xlane.f32.xlu1 %v2340_v1 }
0x14c3   :  { %v2339_v2 = vpop.xlane.xlu1 %2338 }
0x14c4   :  { %v2343_v3 = vmul.f32 0.03125, %v2339_v2 }
0x14c6   :  { %v2345_v11 = vsub.f32 %v2335_v62, %v2343_v3 }
0x14c7   :  { %v2342_v4 = vpop.xlane.xlu1 %2341 }
0x14c8   :  { %v2344_v6 = vmul.f32 0.03125, %v2342_v4  ;;  %v2347_v9 = vmul.f32 %v2345_v11, %v2345_v11 }
0x14ca   :  { %v2346_v10 = vsub.f32 %v2336_v0, %v2344_v6  ;;  %v2349_v12 = vsel %vm69_vm0, %v2347_v9, 0.0 }
0x14cb   :  { %2350 = vadd.xlane.f32.xlu0 %v2349_v12 }
0x14cc   :  { %v2348_v14 = vmul.f32 %v2346_v10, %v2346_v10 }
0x14ce   :  { %v2352_v15 = vsel %vm69_vm0, %v2348_v14, 0.0 }
0x14cf   :  { %2353 = vadd.xlane.f32.xlu1 %v2352_v15 }
0x1558   :  { %v2351_v17 = vpop.xlane.xlu0 %2350 }
0x1559   :  { %v2355_v19 = vmul.f32 0.03125, %v2351_v17 }
0x155b   :  { %v2357_v20 = vadd.f32 1e-05, %v2355_v19 }
0x155c   :  { %v2354_v21 = vpop.xlane.xlu1 %2353 }
0x155d   :  { %2748 = vrsqrt.f32 %v2357_v20  ;;  %v2356_v47 = vmul.f32 0.03125, %v2354_v21 }
0x155f   :  { %v2358_v22 = vadd.f32 1e-05, %v2356_v47 }
0x1561   :  { %2750 = vrsqrt.f32 %v2358_v22 }
0x1567   :  { %v2749_v23 = vpop.eup %2748 }
0x1568   :  { %v2361_v24 = vmul.f32 %v2749_v23, %v2345_v11 }
0x156a   :  { %v2363_v25 = vmul.f32 %v3157_v7, %v2361_v24 }
0x156b   :  { %v2751_v27 = vpop.eup %2750 }
0x156c   :  { %v2362_v28 = vmul.f32 %v2751_v27, %v2346_v10  ;;  %v2365_v29 = vadd.f32 %v3162_v26, %v2363_v25 }
0x156e   :  { %v2364_v18 = vmul.f32 %v3157_v7, %v2362_v28  ;;  %2367 = vst.msk [vmem:[#allocation5] sm:$0xff] %vm69_vm0, %v2365_v29 }
0x1570   :  { %v2366_v30 = vadd.f32 %v3162_v26, %v2364_v18 }
0x1572   :  { %2368 = vst.msk [vmem:[#allocation5 + $0x8] sm:$0xff] %vm69_vm0, %v2366_v30 }
0x1573   :  { %2785 = shalt.err (!%p2782_p12)
}
0x1574   :  { %s2786_s11 = scalar_lea.hbm %s3249_s12, 256 }
0x1575   :  { %p2787_p13 = scmp.ne.s32.totalorder %s3249_s12, %s2786_s11  ;;  %p2790_p0 = scmp.lt.u32.totalorder %s2786_s11, %s3249_s12 }
0x1577   :  { %p2792_p1 = pnand %p2790_p0, %p2787_p13 }
0x1579   :  { %2795 = shalt.err (!%p2792_p1)
}
0x157a   :  { %2380 = dma.vmem_to_hbm [thread:$0]  %s2375_s8, 256, %s3249_s12, [#allocation4], %s2801_s13, %s2801_s13, %s2802_s14  }
0x157b   :  { %2798 = dma.done.wait [#allocation4], 256  }
0x157c   :  { %2799 = vsyncadd [#allocation4], 4294967040 }
0x157d   :  { %2384 = vsyncpa [#allocation3], 1 }
0x157e   :  { %2385 = vsyncpa [#allocation4], 1 }

</bundles_post_ra>
